<compile_context>
chip_gen: v7x
topology: tpu7x:2x2x1
jax: 0.10.0
libtpu: 0.0.40
codegen_flags: <defaults>
</compile_context>

<pallas_src>
import functools

import jax
import jax.numpy as jnp
from jax.experimental import pallas as pl
from jax.experimental.pallas import tpu as pltpu


# ----------------------------------------------------------------------------
# Kernels
# ----------------------------------------------------------------------------
def _bn_fused_kernel(x_ref, gamma_ref, beta_ref, y_ref, mean_ref, var_ref,
                     *, m, eps):
    """Single-pass BN for activations that fit in VMEM (one HBM read+write)."""
    x = x_ref[...].astype(jnp.float32)                               # (N, C, HW)
    s = jnp.sum(jnp.sum(x, axis=2, keepdims=True), axis=0, keepdims=True)
    ss = jnp.sum(jnp.sum(x * x, axis=2, keepdims=True), axis=0, keepdims=True)
    mean = s * (1.0 / m)                                             # (1, C, 1)
    var = jnp.maximum(ss * (1.0 / m) - mean * mean, 0.0)             # biased
    inv_std = jax.lax.rsqrt(var + eps)
    scale = gamma_ref[...].astype(jnp.float32) * inv_std             # (1, C, 1)
    bias = beta_ref[...].astype(jnp.float32) - mean * scale
    y_ref[...] = (x * scale + bias).astype(y_ref.dtype)
    mean_ref[...] = mean
    var_ref[...] = var


def _bn_stats_kernel(x_ref, sum_ref, sumsq_ref, *, hw, tl, nl):
    """Per-channel sum / sum-of-squares over (TN, C, TL) tiles.

    sum_ref / sumsq_ref are (1, 8, C) blocks (one block per N-grid index),
    resident across the spatial-tile grid axis; every sublane row holds the
    same per-channel partial (row 0 is consumed by the finalize).
    """
    l = pl.program_id(1)

    @pl.when(l == 0)
    def _init():
        sum_ref[...] = jnp.zeros_like(sum_ref)
        sumsq_ref[...] = jnp.zeros_like(sumsq_ref)

    x = x_ref[...].astype(jnp.float32)                               # (TN, C, TL)

    def _accum(xv):
        ps = jnp.sum(xv, axis=-1)                                    # (TN, C) lane reduce
        pss = jnp.sum(xv * xv, axis=-1)                              # (TN, C)
        s = jnp.sum(ps, axis=0).reshape(1, 1, -1)                    # (1, 1, C)
        ss = jnp.sum(pss, axis=0).reshape(1, 1, -1)
        sum_ref[...] = sum_ref[...] + s                              # bcast over rows
        sumsq_ref[...] = sumsq_ref[...] + ss

    if hw % tl == 0:
        _accum(x)
    else:
        # Mask only the final (padded) spatial tile; every other tile takes the
        # unmasked fast path, so the iota+select costs nothing overall.
        last = nl - 1
        valid = hw - last * tl

        @pl.when(l < last)
        def _full():
            _accum(x)

        @pl.when(l == last)
        def _tail():
            lane = jax.lax.broadcasted_iota(jnp.int32, x.shape, 2)
            _accum(jnp.where(lane < valid, x, 0.0))


def _bn_norm_kernel(x_ref, scale_ref, bias_ref, y_ref, *, compute_dtype):
    """y = x * scale + bias with per-channel (1, C, 1) scale/bias."""
    x = x_ref[...].astype(compute_dtype)                             # (TN, C, TL)
    scale = scale_ref[...].astype(compute_dtype)                     # (1, C, 1)
    bias = bias_ref[...].astype(compute_dtype)
    y_ref[...] = (x * scale + bias).astype(y_ref.dtype)


# ----------------------------------------------------------------------------
# Host-side helpers
# ----------------------------------------------------------------------------
def _native_bf16_ok():
    """bf16 VPU math is native on v6e/v7x; keep f32 upcast on v5e and older."""
    try:
        kind = jax.devices()[0].device_kind.lower()
    except Exception:
        return False
    return ("v6" in kind) or ("v7" in kind)


def _pick_tiles(n, c, hw, itemsize, target_bytes):
    """Choose (TN, TL) so each x block is ~target_bytes and lane-dense."""
    bytes_per_image = c * hw * itemsize
    if bytes_per_image >= target_bytes:
        # Large per-image slab: one image per block, shrink the lane tile to a
        # multiple of 128 (lane-dense loads/stores).
        lanes = (target_bytes // max(c * itemsize, 1)) // 128 * 128
        tl = int(min(hw, max(128, lanes)))
        tn = 1
    else:
        # Small per-image slab: take the whole spatial extent and batch images.
        # TN is a divisor of N so no image block is ever padded.
        tl = hw
        tn_budget = max(1, target_bytes // bytes_per_image)
        tn = 1
        for d in range(1, n + 1):
            if n % d == 0 and d <= tn_budget:
                tn = d
    return tn, tl


def batch_norm_pallas(x, gamma, beta, moving_mean, moving_var,
                      eps=1e-5, momentum=0.9, *, force_two_pass=False):
    """Training-mode BatchNorm forward on NCHW input.

    Returns (Y_nchw, new_moving_mean (1,C,1,1), new_moving_var (1,C,1,1)).
    Same (d2l-style) conventions as the reference helper: biased variance and
    `new = momentum*old + (1-momentum)*batch` EMA update.
    """
    N, C, H, W = x.shape
    HW = H * W
    M = N * HW
    itemsize = jnp.dtype(x.dtype).itemsize

    x3 = x.reshape(N, C, HW)                         # free view; spatial on lanes
    g3 = gamma.reshape(1, C, 1).astype(jnp.float32)
    b3 = beta.reshape(1, C, 1).astype(jnp.float32)

    fused_ok = (not force_two_pass) and (N * C * HW * 4 <= (4 << 20))

    if fused_ok:
        # ---- Single pass: whole activation resident in VMEM -----------------
        y3, mean3, var3 = pl.pallas_call(
            functools.partial(_bn_fused_kernel, m=float(M), eps=float(eps)),
            out_shape=(
                jax.ShapeDtypeStruct((N, C, HW), x.dtype),
                jax.ShapeDtypeStruct((1, C, 1), jnp.float32),
                jax.ShapeDtypeStruct((1, C, 1), jnp.float32),
            ),
        )(x3, g3, b3)
        mean = mean3.reshape(1, C)
        var = var3.reshape(1, C)
    else:
        # ---- Two passes, each at the HBM roofline ----------------------------
        TARGET = 2 << 20                              # ~2 MiB x blocks
        TN, TL = _pick_tiles(N, C, HW, itemsize, TARGET)
        nN = N // TN
        nL = pl.cdiv(HW, TL)
        block_bytes = TN * C * TL * itemsize
        # Pass 2 double-buffers x and y => ~4 * block_bytes resident.  Explicit
        # limit keeps full pipelining on v5e (16 MiB default scoped) while
        # staying well under v7x's 64 MiB physical VMEM.
        vmem_limit = int(min(48 << 20, max(32 << 20, 6 * block_bytes)))
        # TODO(synk): for very large C (C*128*itemsize >> 2 MiB) also tile C
        # with per-C-tile accumulators to shrink blocks further on v7x.

        x_spec = pl.BlockSpec((TN, C, TL), lambda n, l: (n, 0, l))
        acc_spec = pl.BlockSpec((1, 8, C), lambda n, l: (n, 0, 0))

        stats_kernel = functools.partial(_bn_stats_kernel, hw=HW, tl=TL, nl=nL)
        part_s, part_ss = pl.pallas_call(
            stats_kernel,
            grid=(nN, nL),
            out_shape=(
                jax.ShapeDtypeStruct((nN, 8, C), jnp.float32),
                jax.ShapeDtypeStruct((nN, 8, C), jnp.float32),
            ),
            in_specs=[x_spec],
            out_specs=(acc_spec, acc_spec),
            compiler_params=pltpu.CompilerParams(
                dimension_semantics=("parallel", "arbitrary"),
                vmem_limit_bytes=vmem_limit),
        )(x3)

        # Tiny finalize in plain JAX (per-image-block partials also improve the
        # fp32 summation accuracy vs. one global accumulator).
        s = jnp.sum(part_s[:, 0, :], axis=0)          # (C,)
        ss = jnp.sum(part_ss[:, 0, :], axis=0)        # (C,)
        mean = (s / M).reshape(1, C)
        var = jnp.maximum(ss / M - mean * mean, 0.0).reshape(1, C)  # biased

        inv_std = jax.lax.rsqrt(var + eps)
        scale = g3.reshape(1, C) * inv_std
        bias = b3.reshape(1, C) - mean * scale

        if x.dtype == jnp.bfloat16 and _native_bf16_ok():
            compute_dtype = jnp.bfloat16              # native bf16 FMA (v6e/v7x)
        else:
            compute_dtype = jnp.float32               # keep upcast on v5e / f32 in

        cvec_spec = pl.BlockSpec((1, C, 1), lambda n, l: (0, 0, 0))
        norm_kernel = functools.partial(_bn_norm_kernel,
                                        compute_dtype=compute_dtype)
        y3 = pl.pallas_call(
            norm_kernel,
            grid=(nN, nL),
            out_shape=jax.ShapeDtypeStruct((N, C, HW), x.dtype),
            in_specs=[x_spec, cvec_spec, cvec_spec],
            out_specs=x_spec,
            compiler_params=pltpu.CompilerParams(
                dimension_semantics=("parallel", "parallel"),
                vmem_limit_bytes=vmem_limit),
        )(x3,
          scale.astype(compute_dtype).reshape(1, C, 1),
          bias.astype(compute_dtype).reshape(1, C, 1))

    # EMA updates of the running statistics (2*C elements; plain JAX is free).
    new_mm = (momentum * moving_mean.reshape(1, C).astype(jnp.float32)
              + (1.0 - momentum) * mean)
    new_mv = (momentum * moving_var.reshape(1, C).astype(jnp.float32)
              + (1.0 - momentum) * var)

    y = y3.reshape(N, C, H, W)
    return y, new_mm.reshape(1, C, 1, 1), new_mv.reshape(1, C, 1, 1)


# TODO(synk): eval-mode (no-grad) branch — normalize by moving stats — is a
# trivial elementwise variant of the normalize pass and is not exercised here.


if __name__ == "__main__":
    key = jax.random.PRNGKey(0)
    N, C, H, W = 2, 4, 16, 16
    x = jax.random.normal(key, (N, C, H, W), dtype=jnp.float32)

    # Deterministic parameter init matching the module's __init__ (num_dims=4).
    gamma = jnp.ones((1, C, 1, 1), jnp.float32)
    beta = jnp.zeros((1, C, 1, 1), jnp.float32)
    moving_mean = jnp.zeros((1, C, 1, 1), jnp.float32)
    moving_var = jnp.ones((1, C, 1, 1), jnp.float32)

    # Reference (same math as the PyTorch training branch).
    mean_ref = jnp.mean(x, axis=(0, 2, 3), keepdims=True)
    var_ref = jnp.mean((x - mean_ref) ** 2, axis=(0, 2, 3), keepdims=True)
    y_ref = gamma * (x - mean_ref) / jnp.sqrt(var_ref + 1e-5) + beta
    mm_ref = 0.9 * moving_mean + 0.1 * mean_ref
    mv_ref = 0.9 * moving_var + 0.1 * var_ref

    ok = True
    for force_two_pass in (False, True):   # exercise both the fused and tiled paths
        y, new_mm, new_mv = batch_norm_pallas(
            x, gamma, beta, moving_mean, moving_var,
            eps=1e-5, momentum=0.9, force_two_pass=force_two_pass)
        jax.block_until_ready((y, new_mm, new_mv))
        ok &= bool(jnp.allclose(y, y_ref, atol=1e-5, rtol=1e-5))
        ok &= bool(jnp.allclose(new_mm, mm_ref, atol=1e-5, rtol=1e-5))
        ok &= bool(jnp.allclose(new_mv, mv_ref, atol=1e-5, rtol=1e-5))
    assert ok

    print("KERNEL_OK")
</pallas_src>

<mosaic_0001>
module attributes {stable_mosaic.version = 11 : i64} {
  func.func @_bn_fused_kernel(%arg0: memref<2x4x256xf32, #tpu.memory_space<vmem>>, %arg1: memref<1x4x1xf32, #tpu.memory_space<vmem>>, %arg2: memref<1x4x1xf32, #tpu.memory_space<vmem>>, %arg3: memref<2x4x256xf32, #tpu.memory_space<vmem>>, %arg4: memref<1x4x1xf32, #tpu.memory_space<vmem>>, %arg5: memref<1x4x1xf32, #tpu.memory_space<vmem>>) attributes {dimension_semantics = [], scalar_prefetch = 0 : i64, scratch_operands = 0 : i64, tpu.core_type = #tpu.core_type<tc>} {
    %c0 = arith.constant 0 : index
    %c0_0 = arith.constant 0 : index
    %c0_1 = arith.constant 0 : index
    %0 = vector.load %arg0[%c0, %c0_0, %c0_1] : memref<2x4x256xf32, #tpu.memory_space<vmem>>, vector<2x4x256xf32>
    %cst = arith.constant dense<0.000000e+00> : vector<2x4xf32>
    %1 = vector.multi_reduction <add>, %0, %cst [2] : vector<2x4x256xf32> to vector<2x4xf32>
    %2 = vector.shape_cast %1 : vector<2x4xf32> to vector<2x4x1xf32>
    %cst_2 = arith.constant dense<0.000000e+00> : vector<4x1xf32>
    %3 = vector.multi_reduction <add>, %2, %cst_2 [0] : vector<2x4x1xf32> to vector<4x1xf32>
    %4 = vector.shape_cast %3 : vector<4x1xf32> to vector<1x4x1xf32>
    %5 = arith.mulf %0, %0 : vector<2x4x256xf32>
    %cst_3 = arith.constant dense<0.000000e+00> : vector<2x4xf32>
    %6 = vector.multi_reduction <add>, %5, %cst_3 [2] : vector<2x4x256xf32> to vector<2x4xf32>
    %7 = vector.shape_cast %6 : vector<2x4xf32> to vector<2x4x1xf32>
    %cst_4 = arith.constant dense<0.000000e+00> : vector<4x1xf32>
    %8 = vector.multi_reduction <add>, %7, %cst_4 [0] : vector<2x4x1xf32> to vector<4x1xf32>
    %9 = vector.shape_cast %8 : vector<4x1xf32> to vector<1x4x1xf32>
    %cst_5 = arith.constant 0.001953125 : f32
    %10 = vector.broadcast %cst_5 : f32 to vector<1x4x1xf32>
    %11 = arith.mulf %4, %10 : vector<1x4x1xf32>
    %cst_6 = arith.constant 0.001953125 : f32
    %12 = vector.broadcast %cst_6 : f32 to vector<1x4x1xf32>
    %13 = arith.mulf %9, %12 : vector<1x4x1xf32>
    %14 = arith.mulf %11, %11 : vector<1x4x1xf32>
    %15 = arith.subf %13, %14 : vector<1x4x1xf32>
    %cst_7 = arith.constant 0.000000e+00 : f32
    %16 = vector.broadcast %cst_7 : f32 to vector<1x4x1xf32>
    %17 = arith.maximumf %15, %16 : vector<1x4x1xf32>
    %cst_8 = arith.constant 9.99999974E-6 : f32
    %18 = vector.broadcast %cst_8 : f32 to vector<1x4x1xf32>
    %19 = arith.addf %17, %18 : vector<1x4x1xf32>
    %20 = math.rsqrt %19 : vector<1x4x1xf32>
    %c0_9 = arith.constant 0 : index
    %c0_10 = arith.constant 0 : index
    %c0_11 = arith.constant 0 : index
    %21 = vector.load %arg1[%c0_9, %c0_10, %c0_11] : memref<1x4x1xf32, #tpu.memory_space<vmem>>, vector<1x4x1xf32>
    %22 = arith.mulf %21, %20 : vector<1x4x1xf32>
    %c0_12 = arith.constant 0 : index
    %c0_13 = arith.constant 0 : index
    %c0_14 = arith.constant 0 : index
    %23 = vector.load %arg2[%c0_12, %c0_13, %c0_14] : memref<1x4x1xf32, #tpu.memory_space<vmem>>, vector<1x4x1xf32>
    %24 = arith.mulf %11, %22 : vector<1x4x1xf32>
    %25 = arith.subf %23, %24 : vector<1x4x1xf32>
    %26 = vector.broadcast %22 : vector<1x4x1xf32> to vector<2x4x256xf32>
    %27 = arith.mulf %0, %26 : vector<2x4x256xf32>
    %28 = vector.broadcast %25 : vector<1x4x1xf32> to vector<2x4x256xf32>
    %29 = arith.addf %27, %28 : vector<2x4x256xf32>
    %c0_15 = arith.constant 0 : index
    %c0_16 = arith.constant 0 : index
    %c0_17 = arith.constant 0 : index
    %30 = vector.load %arg3[%c0_15, %c0_16, %c0_17] : memref<2x4x256xf32, #tpu.memory_space<vmem>>, vector<2x4x256xf32>
    tpu.vector_store %arg3[%c0_15, %c0_16, %c0_17], %29 {strides = array<i32>} : memref<2x4x256xf32, #tpu.memory_space<vmem>>, vector<2x4x256xf32>,
    %c0_18 = arith.constant 0 : index
    %c0_19 = arith.constant 0 : index
    %c0_20 = arith.constant 0 : index
    %31 = vector.load %arg4[%c0_18, %c0_19, %c0_20] : memref<1x4x1xf32, #tpu.memory_space<vmem>>, vector<1x4x1xf32>
    tpu.vector_store %arg4[%c0_18, %c0_19, %c0_20], %11 {strides = array<i32>} : memref<1x4x1xf32, #tpu.memory_space<vmem>>, vector<1x4x1xf32>,
    %c0_21 = arith.constant 0 : index
    %c0_22 = arith.constant 0 : index
    %c0_23 = arith.constant 0 : index
    %32 = vector.load %arg5[%c0_21, %c0_22, %c0_23] : memref<1x4x1xf32, #tpu.memory_space<vmem>>, vector<1x4x1xf32>
    tpu.vector_store %arg5[%c0_21, %c0_22, %c0_23], %17 {strides = array<i32>} : memref<1x4x1xf32, #tpu.memory_space<vmem>>, vector<1x4x1xf32>,
    return
  }
}

</mosaic_0001>

<bundles_post_ra>
// kernel: tpu_custom_call.1
= control target key start
LH: loop header
LB: loop body
LE: loop exit
PB: predicated region body
PF: predicated region fallthrough
CT: control target
= control target key end

     0   :  { %11 = vsyncpa [#allocation3], 0  ;;  %s311_s0 = inlined_call_operand.hbm [shape: f32[2,4,256], index: 0, kind: input, shape index: {}]   ;;  %s312_s1 = inlined_call_operand.vmem [shape: f32[1,4,1], index: 1, kind: input, shape index: {}]   ;;  %s313_s2 = inlined_call_operand.vmem [shape: f32[1,4,1], index: 2, kind: input, shape index: {}]   ;;  %s314_s3 = inlined_call_operand.hbm [shape: f32[2,4,256], index: 3, kind: output, shape index: {0}]   ;;  %s315_s4 = inlined_call_operand.vmem [shape: f32[1,4,1], index: 4, kind: output, shape index: {1}]   ;;  %s316_s5 = inlined_call_operand.vmem [shape: f32[1,4,1], index: 5, kind: output, shape index: {2}]  }
   0x1   :  { %12 = vsyncpa [#allocation4], 0  ;;  %s205_s18 = smov [#allocation2]   ;;  %s157_s22 = scalar_lea.hbm %s311_s0, 256 }
   0x2   :  { %s18_s19 = sshll.u32 %s205_s18, 4  ;;  %p158_p0 = scmp.ne.s32.totalorder %s311_s0, %s157_s22  ;;  %s19_s19 = int_to_ptr.vmem [resolvable:$true] %s18_s19 }
   0x3   :  { %p161_p1 = scmp.lt.u32.totalorder %s157_s22, %s311_s0 }
   0x5   :  { %p163_p2 = pnand %p161_p1, %p158_p0 }
   0x7   :  { %166 = shalt.err (!%p163_p2)
}
   0x8   :  { %s167_s27 = scalar_lea.vmem %s19_s19, 256  ;;  %p172_p4 = scmp.lt.s32.totalorder %s19_s19, %s19_s19 }
   0x9   :  { %p168_p3 = scmp.ne.s32.totalorder %s19_s19, %s167_s27  ;;  %p173_p5 = scmp.lt.s32.totalorder %s167_s27, %s167_s27 }
   0xb   :  { %p174_p6 = por %p173_p5, %p172_p4 }
   0xd   :  { %p175_p7 = pnand %p174_p6, %p168_p3 }
   0xf   :  { %178 = shalt.err (!%p175_p7)
}
  0x10   :  { %s206_s28 = smov 128   ;;  %s207_s29 = smov 8  }
  0x11   :  { %24 = dma.hbm_to_vmem [thread:$0]  %s311_s0, 256, %s19_s19, [#allocation3], %s206_s28, %s206_s28, %s207_s29  }
  0x12   :  { %201 = dma.done.wait [#allocation3], 256  }
  0x13   :  { %202 = vsyncadd [#allocation3], 4294967040  ;;  %vm40_vm0 = vcmask 1043456   ;;  %v256_v0 = vld [vmem:[#allocation2] sm:$0xff]  ;;  %v258_v1 = vld [vmem:[#allocation2 + $0x8] sm:$0xff]  ;;  %v208_v20 = vmov 0   ;;  %v94_v45 = vlaneseq }
  0x14   :  { %v36_v2 = vcombine.high %v256_v0, %v256_v0  ;;  %v41_v3 = vsel %vm40_vm0, %v256_v0, 0.0  ;;  %v54_v4 = vmul.f32 %v256_v0, %v256_v0  ;;  %v37_v5 = vcombine.high %v258_v1, %v258_v1  ;;  %151 = vset.pattern.permute.xlu0 %v208_v20  ;;  %152 = vset.pattern.permute.xlu1 %v208_v20  ;;  %v82_v37 = vld [vmem:[%s312_s1] sm:$0xf]  ;;  %s210_s1 = smov [#allocation5]  }
  0x15   :  { %v46_v6 = vsel %vm40_vm0, %v258_v1, 0.0  ;;  %v55_v7 = vmul.f32 %v258_v1, %v258_v1  ;;  %vm117_vm1 = vcmask 3072   ;;  %v84_v40 = vld [vmem:[%s313_s2] sm:$0xf]  ;;  %v209_v43 = vmov 839922192  }
  0x16   :  { %v42_v8 = vsel %vm40_vm0, %v36_v2, 0.0  ;;  %v58_v9 = vcombine.high %v54_v4, %v54_v4  ;;  %v62_v10 = vsel %vm40_vm0, %v54_v4, 0.0  ;;  %v47_v11 = vsel %vm40_vm0, %v37_v5, 0.0 }
  0x17   :  { %v43_v12 = vadd.f32 %v42_v8, %v41_v3  ;;  %v59_v13 = vcombine.high %v55_v7, %v55_v7  ;;  %v67_v15 = vsel %vm40_vm0, %v55_v7, 0.0  ;;  %v48_v17 = vadd.f32 %v47_v11, %v46_v6 }
  0x18   :  { %v63_v14 = vsel %vm40_vm0, %v58_v9, 0.0  ;;  %v92_v44 = vunpack.c.l.s4 %v209_v43  ;;  %v95_v47 = vshrl.u32 %v94_v45, 7 }
  0x19   :  { %44 = vadd.xlane.f32.xlu0 %v43_v12  ;;  %v64_v16 = vadd.f32 %v63_v14, %v62_v10  ;;  %v68_v18 = vsel %vm40_vm0, %v59_v13, 0.0 }
  0x1a   :  { %v69_v19 = vadd.f32 %v68_v18, %v67_v15  ;;  %v93_v46 = vunpack.c.0.s8 %v92_v44 }
  0x1b   :  { %65 = vadd.xlane.f32.xlu1 %v64_v16 }
  0x1c   :  { %v96_v48 = vsub.s32 %v93_v46, %v95_v47 }
  0x1d   :  { %49 = vadd.xlane.f32.xlu0 %v48_v17 }
  0x1f   :  { %70 = vadd.xlane.f32.xlu1 %v69_v19 }
  0xa6   :  { %v45_v21 = vpop.xlane.xlu0 %44 }
  0xa7   :  { %v51_v24 = vsel %vm40_vm0, %v45_v21, 0.0 }
  0xa8   :  { %v66_v22 = vpop.xlane.xlu1 %65 }
  0xa9   :  { %v72_v28 = vsel %vm40_vm0, %v66_v22, 0.0 }
  0xaa   :  { %v50_v23 = vpop.xlane.xlu0 %49 }
  0xab   :  { %v52_v25 = vsel %vm40_vm0, %v50_v23, 0.0 }
  0xac   :  { %v53_v26 = vadd.f32 %v52_v25, %v51_v24  ;;  %v71_v27 = vpop.xlane.xlu1 %70 }
  0xad   :  { %v73_v29 = vsel %vm40_vm0, %v71_v27, 0.0 }
  0xae   :  { %v75_v30 = vmul.f32 0.001953125, %v53_v26  ;;  %v74_v31 = vadd.f32 %v73_v29, %v72_v28 }
  0xb0   :  { %118 = vst.msk [vmem:[%s315_s4] sm:$0xf] %vm117_vm1, %v75_v30  ;;  %v76_v32 = vmul.f32 0.001953125, %v74_v31  ;;  %v77_v33 = vmul.f32 %v75_v30, %v75_v30  ;;  %s125_s4 = sshll.u32 %s210_s1, 4  ;;  %s126_s4 = int_to_ptr.vmem [resolvable:$true] %s125_s4 }
  0xb1   :  { %s179_s2 = scalar_lea.vmem %s126_s4, 256  ;;  %p184_p9 = scmp.lt.s32.totalorder %s126_s4, %s126_s4 }
  0xb2   :  { %v78_v34 = vsub.f32 %v76_v32, %v77_v33  ;;  %p180_p8 = scmp.ne.s32.totalorder %s126_s4, %s179_s2  ;;  %p185_p10 = scmp.lt.s32.totalorder %s179_s2, %s179_s2 }
  0xb4   :  { %v79_v35 = vmax.f32 %v78_v34, 0.0  ;;  %p186_p11 = por %p185_p10, %p184_p9 }
  0xb6   :  { %v80_v36 = vadd.f32 1e-05, %v79_v35  ;;  %119 = vst.msk [vmem:[%s316_s5] sm:$0xf] %vm117_vm1, %v79_v35  ;;  %p187_p12 = pnand %p186_p11, %p180_p8 }
  0xb8   :  { %155 = vrsqrt.f32 %v80_v36 }
  0xc2   :  { %v156_v38 = vpop.eup %155 }
  0xc3   :  { %v83_v39 = vmul.f32 %v156_v38, %v82_v37 }
  0xc5   :  { %89 = vperm.xlu0 %151, %v83_v39   ;;  %v85_v41 = vmul.f32 %v83_v39, %v75_v30 }
  0xc7   :  { %v86_v42 = vsub.f32 %v84_v40, %v85_v41 }
  0xc9   :  { %103 = vperm.xlu1 %152, %v86_v42  }
 0x144   :  { %v90_v49 = vpop.permute.xlu0 %89 }
 0x145   :  { %v97_v50 = vrot.slane %v90_v49, %v96_v48 }
 0x147   :  { %v99_v52 = vmul.f32 %v97_v50, %v256_v0  ;;  %v100_v53 = vmul.f32 %v97_v50, %v258_v1 }
 0x148   :  { %v104_v51 = vpop.permute.xlu1 %103 }
 0x149   :  { %v111_v54 = vrot.slane %v104_v51, %v96_v48 }
 0x14b   :  { %v113_v55 = vadd.f32 %v111_v54, %v99_v52  ;;  %v114_v56 = vadd.f32 %v111_v54, %v100_v53 }
 0x14d   :  { %115 = vst [vmem:[#allocation5] sm:$0xff] %v113_v55  ;;  %116 = vst [vmem:[#allocation5 + $0x8] sm:$0xff] %v114_v56 }
 0x14e   :  { %190 = shalt.err (!%p187_p12)
}
 0x14f   :  { %s191_s15 = scalar_lea.hbm %s314_s3, 256 }
 0x150   :  { %p192_p13 = scmp.ne.s32.totalorder %s314_s3, %s191_s15  ;;  %p195_p0 = scmp.lt.u32.totalorder %s191_s15, %s314_s3 }
 0x152   :  { %p197_p1 = pnand %p195_p0, %p192_p13 }
 0x154   :  { %200 = shalt.err (!%p197_p1)
}
 0x155   :  { %131 = dma.vmem_to_hbm [thread:$0]  %s126_s4, 256, %s314_s3, [#allocation4], %s206_s28, %s206_s28, %s207_s29  }
 0x156   :  { %203 = dma.done.wait [#allocation4], 256  }
 0x157   :  { %204 = vsyncadd [#allocation4], 4294967040 }
 0x158   :  { %143 = vsyncpa [#allocation3], 1 }
 0x159   :  { %144 = vsyncpa [#allocation4], 1 }

</bundles_post_ra>
